<compile_context>
chip_gen: v7x
topology: tpu7x:2x2x1
jax: 0.10.0
libtpu: 0.0.40
codegen_flags: <defaults>
</compile_context>

<pallas_src>
import math

import jax
import jax.numpy as jnp
from jax.experimental import pallas as pl
from jax.experimental.pallas import tpu as pltpu


# ---------------------------------------------------------------------------
# Hardware / VMEM-aware block selection
# ---------------------------------------------------------------------------
def _tpu_vmem_and_cores():
    """Best-effort query of per-core VMEM capacity and TensorCore count."""
    cap = None
    cores = 1
    try:
        info = pltpu.get_tpu_info()
        c = getattr(info, "vmem_capacity_bytes", None)
        if c:
            cap = int(c)
        for name in ("num_cores", "tensor_core_count", "num_tensorcores"):
            v = getattr(info, name, None)
            if v:
                cores = max(cores, int(v))
                break
    except Exception:
        pass
    try:
        v = getattr(jax.devices()[0], "num_cores", None)
        if v:
            cores = max(cores, int(v))
    except Exception:
        pass
    if cap is None or cap <= 0:
        cap = 64 * 1024 * 1024  # assume the smallest generation (v7x: 64 MiB / TC)
    return cap, max(1, cores)


def _vmem_estimate(b_blk, S1, S2, D1, D2, H, k_dim, v_dim, cbytes):
    """Rough per-grid-step VMEM working-set estimate in bytes."""
    kv = k_dim + v_dim
    N1, N2 = b_blk * S1, b_blk * S2
    est = 0
    # Double-buffered pipeline blocks.
    est += 2 * N1 * D1 * 4               # x1 block (f32)
    est += 2 * N2 * D2 * cbytes          # x2 block (compute dtype)
    est += 2 * N1 * D1 * 4               # out block (f32)
    # Weights (assume double-buffered to be safe).
    w_elems = D1 * H * k_dim + D2 * H * kv + H * v_dim * D1 + 3 * D1
    est += 2 * w_elems * cbytes
    # Live intermediates (approximate peak).
    est += N1 * H * k_dim * (4 + cbytes)             # qf (f32) + q heads (compute)
    est += N2 * H * kv * (4 + cbytes)                # kvf (f32) + k/v heads (compute)
    est += H * b_blk * S1 * S2 * (4 + 4 + cbytes)    # scores f32, exp f32, p compute
    est += H * N1 * v_dim * (4 + cbytes)             # ctx f32 + ctx_cat compute
    est += 4 * N1 * D1 * 4                           # attn_out / residual / LN temps
    return int(est * 1.2)


def _pick_batch_block(batch, est_fn, budget, num_cores):
    """Largest divisor of `batch` whose estimated working set fits `budget`.

    On multi-TensorCore chips, prefer leaving >= num_cores grid steps so every
    core gets work; on single-core chips just maximize the block.
    """
    divisors = [d for d in range(1, batch + 1) if batch % d == 0]
    fitting = [d for d in divisors if est_fn(d) <= budget]
    if not fitting:
        fitting = [1]
    if num_cores >= 2:
        cand = [d for d in fitting if batch // d >= num_cores]
        if cand:
            return max(cand)
    return max(fitting)


# ---------------------------------------------------------------------------
# Fused encoder-layer kernel
# ---------------------------------------------------------------------------
def _make_layer_kernel(num_heads, k_dim, v_dim, eps, compute_dtype):
    scale = 1.0 / math.sqrt(k_dim)
    H = num_heads
    kvd = k_dim + v_dim

    def kernel(x1_ref, x2_ref, wq_ref, wkv_ref, wo_ref, bo_ref, g_ref, beta_ref, o_ref):
        Bb, S1, D1 = x1_ref.shape
        _, S2, D2 = x2_ref.shape
        N1 = Bb * S1
        N2 = Bb * S2

        # Flatten (batch_block, seq) -> rows so the projections see M = Bb*S rows.
        x1_f32 = x1_ref[...].reshape(N1, D1)                     # residual path (f32)
        x1c = x1_f32.astype(compute_dtype)
        x2c = x2_ref[...].reshape(N2, D2)                        # already compute_dtype

        # --- Full-width 2-D projections on the MXU (f32 accumulation). ---
        # Q scaled once here (H*N1*k elements) instead of per score matrix.
        qf = jnp.dot(x1c, wq_ref[...], preferred_element_type=jnp.float32) * scale   # (N1, H*k)
        kvf = jnp.dot(x2c, wkv_ref[...], preferred_element_type=jnp.float32)         # (N2, H*(k+v))

        # --- Head-major relayout via static lane slices (no activation broadcast). ---
        q_heads = [qf[:, h * k_dim:(h + 1) * k_dim].reshape(Bb, S1, k_dim)
                   for h in range(H)]
        k_heads = [kvf[:, h * kvd:h * kvd + k_dim].reshape(Bb, S2, k_dim)
                   for h in range(H)]
        v_heads = [kvf[:, h * kvd + k_dim:(h + 1) * kvd].reshape(Bb, S2, v_dim)
                   for h in range(H)]
        qb = jnp.concatenate(q_heads, axis=0).astype(compute_dtype)   # (H*Bb, S1, k)
        kb = jnp.concatenate(k_heads, axis=0).astype(compute_dtype)   # (H*Bb, S2, k)
        vb = jnp.concatenate(v_heads, axis=0).astype(compute_dtype)   # (H*Bb, S2, v)

        # --- Scores + safe softmax (elementwise math strictly in f32). ---
        s = jnp.einsum('bqd,bkd->bqk', qb, kb,
                       preferred_element_type=jnp.float32)            # (H*Bb, S1, S2)
        m = jnp.max(s, axis=-1, keepdims=True)
        p = jnp.exp(s - m)
        denom = jnp.sum(p, axis=-1, keepdims=True)

        # PV matmul on un-normalized p (in [0,1], safe to cast); normalize afterwards:
        # O(S1*v) multiplies per head instead of O(S1*S2); reciprocal on the EUP slot.
        ctx = jnp.einsum('bqk,bkd->bqd', p.astype(compute_dtype), vb,
                         preferred_element_type=jnp.float32)          # (H*Bb, S1, v)
        ctx = ctx * pl.reciprocal(denom, approx=True)

        # --- Output projection: lane-concat heads, single matmul (head-sum in the MXU).
        ctx4 = ctx.reshape(H, Bb, S1, v_dim)
        ctx_cat = jnp.concatenate([ctx4[h] for h in range(H)], axis=-1)   # (Bb, S1, H*v)
        ctx_cat = ctx_cat.reshape(N1, H * v_dim).astype(compute_dtype)
        attn_out = jnp.dot(ctx_cat, wo_ref[...],
                           preferred_element_type=jnp.float32) + bo_ref[...]   # (N1, D1)

        # --- Residual + LayerNorm (dropout p=0.0 -> identity). ---
        y = x1_f32 + attn_out
        mu = jnp.mean(y, axis=-1, keepdims=True)
        var = jnp.mean(jnp.square(y - mu), axis=-1, keepdims=True)
        out = (y - mu) * jax.lax.rsqrt(var + eps) * g_ref[...] + beta_ref[...]

        o_ref[...] = out.reshape(Bb, S1, D1).astype(o_ref.dtype)

    return kernel


def cross_attention_layer(x1, x2, wq, wk, wv, wo, bo, gamma, beta, *,
                          num_heads, k_dim, v_dim, eps=1e-5,
                          compute_dtype=jnp.bfloat16, b_blk=None):
    """One encoder layer: LayerNorm(x1 + CrossAttention(x1, x2)), fused Pallas kernel."""
    B, S1, D1 = x1.shape
    B2, S2, D2 = x2.shape
    assert B2 == B
    H = num_heads
    HK = H * k_dim
    HV = H * v_dim
    kvd = k_dim + v_dim
    assert wq.shape == (D1, HK) and wk.shape == (D2, HK) and wv.shape == (D2, HV)
    assert wo.shape == (HV, D1) and bo.shape == (D1,)

    cbytes = jnp.dtype(compute_dtype).itemsize
    vmem_cap, num_cores = _tpu_vmem_and_cores()
    budget = int(vmem_cap * 0.40)
    vmem_limit = int(min(vmem_cap * 0.85,
                         max(48 * 1024 * 1024, budget + (16 << 20))))

    if b_blk is None:
        est = lambda d: _vmem_estimate(d, S1, S2, D1, D2, H, k_dim, v_dim, cbytes)
        b_blk = _pick_batch_block(B, est, budget, num_cores)
    assert B % b_blk == 0
    grid = (B // b_blk,)

    # --- Weight prep (tiny, done once outside the kernel, pre-cast to compute_dtype). ---
    wq_c = wq.astype(compute_dtype)                                      # (D1, H*k)
    wk3 = wk.reshape(D2, H, k_dim)
    wv3 = wv.reshape(D2, H, v_dim)
    wkv_c = jnp.concatenate([wk3, wv3], axis=-1).reshape(D2, H * kvd)    # (D2, H*(k+v))
    wkv_c = wkv_c.astype(compute_dtype)
    wo_c = wo.astype(compute_dtype)                                      # (H*v, D1)
    bo2 = bo.reshape(1, D1).astype(jnp.float32)
    g2 = gamma.reshape(1, D1).astype(jnp.float32)
    be2 = beta.reshape(1, D1).astype(jnp.float32)
    x2c = x2.astype(compute_dtype)                                       # halve x2 DMA

    kernel = _make_layer_kernel(num_heads, k_dim, v_dim, eps, compute_dtype)

    out = pl.pallas_call(
        kernel,
        out_shape=jax.ShapeDtypeStruct((B, S1, D1), x1.dtype),
        grid_spec=pltpu.PrefetchScalarGridSpec(
            num_scalar_prefetch=0,
            grid=grid,
            in_specs=[
                pl.BlockSpec((b_blk, S1, D1), lambda b: (b, 0, 0)),     # x1 (f32)
                pl.BlockSpec((b_blk, S2, D2), lambda b: (b, 0, 0)),     # x2 (compute dtype)
                pl.BlockSpec((D1, HK), lambda b: (0, 0)),               # Wq
                pl.BlockSpec((D2, H * kvd), lambda b: (0, 0)),          # fused Wk|Wv
                pl.BlockSpec((HV, D1), lambda b: (0, 0)),               # Wo
                pl.BlockSpec((1, D1), lambda b: (0, 0)),                # bo
                pl.BlockSpec((1, D1), lambda b: (0, 0)),                # LN gamma
                pl.BlockSpec((1, D1), lambda b: (0, 0)),                # LN beta
            ],
            out_specs=pl.BlockSpec((b_blk, S1, D1), lambda b: (b, 0, 0)),
        ),
        compiler_params=pltpu.CompilerParams(
            dimension_semantics=("parallel",),
            vmem_limit_bytes=vmem_limit,
        ),
    )(x1, x2c, wq_c, wkv_c, wo_c, bo2, g2, be2)
    return out


def cross_attention_encoder(query_features, kv_features, layer_params, gamma, beta, *,
                            num_heads, k_dim, v_dim, eps=1e-5,
                            compute_dtype=jnp.bfloat16, b_blk=None):
    """CrossAttentionEncoder.forward: x = LN(x + CrossAttn(x, kv)) per layer."""
    x = query_features
    for (wq, wk, wv, wo, bo) in layer_params:
        x = cross_attention_layer(
            x, kv_features, wq, wk, wv, wo, bo, gamma, beta,
            num_heads=num_heads, k_dim=k_dim, v_dim=v_dim, eps=eps,
            compute_dtype=compute_dtype, b_blk=b_blk)
    return x


# ---------------------------------------------------------------------------
# Pure-JAX reference (mirrors the PyTorch module exactly).
# ---------------------------------------------------------------------------
def _reference_layer(x1, x2, wq, wk, wv, wo, bo, *, num_heads, k_dim, v_dim):
    B, S1, D1 = x1.shape
    S2 = x2.shape[1]
    q = (x1 @ wq).reshape(B, S1, num_heads, k_dim).transpose(0, 2, 1, 3)
    k = (x2 @ wk).reshape(B, S2, num_heads, k_dim).transpose(0, 2, 1, 3)
    v = (x2 @ wv).reshape(B, S2, num_heads, v_dim).transpose(0, 2, 1, 3)
    attn = jnp.einsum('bhqd,bhkd->bhqk', q, k) / math.sqrt(k_dim)
    attn = jax.nn.softmax(attn, axis=-1)
    ctx = jnp.einsum('bhqk,bhkd->bhqd', attn, v).transpose(0, 2, 1, 3)
    ctx = ctx.reshape(B, S1, num_heads * v_dim)
    return ctx @ wo + bo.reshape(1, 1, D1)


def _reference_encoder(x1, x2, layer_params, gamma, beta, *,
                       num_heads, k_dim, v_dim, eps=1e-5):
    x = x1
    for (wq, wk, wv, wo, bo) in layer_params:
        attn_out = _reference_layer(x, x2, wq, wk, wv, wo, bo,
                                    num_heads=num_heads, k_dim=k_dim, v_dim=v_dim)
        y = x + attn_out
        mu = y.mean(-1, keepdims=True)
        var = ((y - mu) ** 2).mean(-1, keepdims=True)
        x = (y - mu) / jnp.sqrt(var + eps) * gamma + beta
    return x


if __name__ == "__main__":
    # Small, module-consistent shapes.
    B, S1, S2 = 2, 8, 8
    in_dim1, in_dim2 = 32, 32
    k_dim, v_dim, num_heads = 16, 16, 2
    num_layers = 2
    HK, HV = num_heads * k_dim, num_heads * v_dim

    keys = jax.random.split(jax.random.PRNGKey(0), 4 + 5 * num_layers)
    x1 = jax.random.normal(keys[0], (B, S1, in_dim1), dtype=jnp.float32)
    x2 = jax.random.normal(keys[1], (B, S2, in_dim2), dtype=jnp.float32)
    # LayerNorm affine params (shared across layers, as self.norm in the module).
    gamma = 1.0 + 0.1 * jax.random.normal(keys[2], (in_dim1,), dtype=jnp.float32)
    beta = 0.1 * jax.random.normal(keys[3], (in_dim1,), dtype=jnp.float32)

    layer_params = []
    for l in range(num_layers):
        kwq, kwk, kwv, kwo, kwb = keys[4 + 5 * l: 4 + 5 * (l + 1)]
        layer_params.append((
            0.1 * jax.random.normal(kwq, (in_dim1, HK), dtype=jnp.float32),
            0.1 * jax.random.normal(kwk, (in_dim2, HK), dtype=jnp.float32),
            0.1 * jax.random.normal(kwv, (in_dim2, HV), dtype=jnp.float32),
            0.1 * jax.random.normal(kwo, (HV, in_dim1), dtype=jnp.float32),
            0.1 * jax.random.normal(kwb, (in_dim1,), dtype=jnp.float32),
        ))

    ref = _reference_encoder(x1, x2, layer_params, gamma, beta,
                             num_heads=num_heads, k_dim=k_dim, v_dim=v_dim)

    # f32 MXU operands: tight correctness check of the kernel structure.
    out_f32 = cross_attention_encoder(
        x1, x2, layer_params, gamma, beta,
        num_heads=num_heads, k_dim=k_dim, v_dim=v_dim,
        compute_dtype=jnp.float32)
    out_f32 = jax.block_until_ready(out_f32)
    assert out_f32.shape == (B, S1, in_dim1)
    assert jnp.allclose(out_f32, ref, atol=2e-3, rtol=2e-3), \
        "f32 kernel mismatch vs JAX reference"

    # bf16 MXU operands (fast path on v6e/v7x); accumulation + softmax/LN in f32.
    out_bf16 = cross_attention_encoder(
        x1, x2, layer_params, gamma, beta,
        num_heads=num_heads, k_dim=k_dim, v_dim=v_dim,
        compute_dtype=jnp.bfloat16)
    out_bf16 = jax.block_until_ready(out_bf16)
    assert jnp.allclose(out_bf16, ref, atol=1.5e-1, rtol=1.5e-1), \
        "bf16 kernel mismatch vs JAX reference"

    print("KERNEL_OK")
</pallas_src>

<mosaic_0001>
module attributes {stable_mosaic.version = 11 : i64} {
  func.func @kernel(%arg0: i32, %arg1: memref<2x8x32xf32, #tpu.memory_space<vmem>>, %arg2: memref<2x8x32xf32, #tpu.memory_space<vmem>>, %arg3: memref<32x32xf32, #tpu.memory_space<vmem>>, %arg4: memref<32x64xf32, #tpu.memory_space<vmem>>, %arg5: memref<32x32xf32, #tpu.memory_space<vmem>>, %arg6: memref<1x32xf32, #tpu.memory_space<vmem>>, %arg7: memref<1x32xf32, #tpu.memory_space<vmem>>, %arg8: memref<1x32xf32, #tpu.memory_space<vmem>>, %arg9: memref<2x8x32xf32, #tpu.memory_space<vmem>>) attributes {dimension_semantics = [#tpu.dimension_semantics<parallel>], iteration_bounds = array<i64: 1>, scalar_prefetch = 0 : i64, scratch_operands = 0 : i64, tpu.core_type = #tpu.core_type<tc>, window_params = [{transform_indices = @transform_0, window_bounds = array<i64: 2, 8, 32>}, {transform_indices = @transform_1, window_bounds = array<i64: 2, 8, 32>}, {pipeline_mode = #tpu.pipeline_mode<synchronous>, transform_indices = @transform_2, window_bounds = array<i64: 32, 32>}, {pipeline_mode = #tpu.pipeline_mode<synchronous>, transform_indices = @transform_3, window_bounds = array<i64: 32, 64>}, {pipeline_mode = #tpu.pipeline_mode<synchronous>, transform_indices = @transform_4, window_bounds = array<i64: 32, 32>}, {pipeline_mode = #tpu.pipeline_mode<synchronous>, transform_indices = @transform_5, window_bounds = array<i64: 1, 32>}, {pipeline_mode = #tpu.pipeline_mode<synchronous>, transform_indices = @transform_6, window_bounds = array<i64: 1, 32>}, {pipeline_mode = #tpu.pipeline_mode<synchronous>, transform_indices = @transform_7, window_bounds = array<i64: 1, 32>}, {transform_indices = @transform_8, window_bounds = array<i64: 2, 8, 32>}]} {
    %c0 = arith.constant 0 : index
    %c0_0 = arith.constant 0 : index
    %c0_1 = arith.constant 0 : index
    %0 = vector.load %arg1[%c0, %c0_0, %c0_1] : memref<2x8x32xf32, #tpu.memory_space<vmem>>, vector<2x8x32xf32>
    %1 = vector.shape_cast %0 : vector<2x8x32xf32> to vector<16x32xf32>
    %c0_2 = arith.constant 0 : index
    %c0_3 = arith.constant 0 : index
    %c0_4 = arith.constant 0 : index
    %2 = vector.load %arg2[%c0_2, %c0_3, %c0_4] : memref<2x8x32xf32, #tpu.memory_space<vmem>>, vector<2x8x32xf32>
    %3 = vector.shape_cast %2 : vector<2x8x32xf32> to vector<16x32xf32>
    %c0_5 = arith.constant 0 : index
    %c0_6 = arith.constant 0 : index
    %4 = vector.load %arg3[%c0_5, %c0_6] : memref<32x32xf32, #tpu.memory_space<vmem>>, vector<32x32xf32>
    %cst = arith.constant dense<0.000000e+00> : vector<16x32xf32>
    %5 = tpu.matmul %1, %4, %cst {dimension_numbers = #tpu.dot_dimension_numbers<[1], [0], [0], [1], [0, 0, 1, 1], [], []>} : vector<16x32xf32>, vector<32x32xf32>, vector<16x32xf32> -> vector<16x32xf32>
    %cst_7 = arith.constant 2.500000e-01 : f32
    %6 = vector.broadcast %cst_7 : f32 to vector<16x32xf32>
    %7 = arith.mulf %5, %6 : vector<16x32xf32>
    %c0_8 = arith.constant 0 : index
    %c0_9 = arith.constant 0 : index
    %8 = vector.load %arg4[%c0_8, %c0_9] : memref<32x64xf32, #tpu.memory_space<vmem>>, vector<32x64xf32>
    %cst_10 = arith.constant dense<0.000000e+00> : vector<16x64xf32>
    %9 = tpu.matmul %3, %8, %cst_10 {dimension_numbers = #tpu.dot_dimension_numbers<[1], [0], [0], [1], [0, 0, 1, 1], [], []>} : vector<16x32xf32>, vector<32x64xf32>, vector<16x64xf32> -> vector<16x64xf32>
    %10 = vector.extract_strided_slice %7 {offsets = [0, 0], sizes = [16, 16], strides = [1, 1]} : vector<16x32xf32> to vector<16x16xf32>
    %11 = vector.shape_cast %10 : vector<16x16xf32> to vector<2x8x16xf32>
    %12 = vector.extract_strided_slice %7 {offsets = [0, 16], sizes = [16, 16], strides = [1, 1]} : vector<16x32xf32> to vector<16x16xf32>
    %13 = vector.shape_cast %12 : vector<16x16xf32> to vector<2x8x16xf32>
    %14 = vector.extract_strided_slice %9 {offsets = [0, 0], sizes = [16, 16], strides = [1, 1]} : vector<16x64xf32> to vector<16x16xf32>
    %15 = vector.shape_cast %14 : vector<16x16xf32> to vector<2x8x16xf32>
    %16 = vector.extract_strided_slice %9 {offsets = [0, 32], sizes = [16, 16], strides = [1, 1]} : vector<16x64xf32> to vector<16x16xf32>
    %17 = vector.shape_cast %16 : vector<16x16xf32> to vector<2x8x16xf32>
    %18 = vector.extract_strided_slice %9 {offsets = [0, 16], sizes = [16, 16], strides = [1, 1]} : vector<16x64xf32> to vector<16x16xf32>
    %19 = vector.shape_cast %18 : vector<16x16xf32> to vector<2x8x16xf32>
    %20 = vector.extract_strided_slice %9 {offsets = [0, 48], sizes = [16, 16], strides = [1, 1]} : vector<16x64xf32> to vector<16x16xf32>
    %21 = vector.shape_cast %20 : vector<16x16xf32> to vector<2x8x16xf32>
    %22 = tpu.concatenate %11, %13 in 0 : vector<2x8x16xf32>, vector<2x8x16xf32> -> vector<4x8x16xf32>
    %23 = tpu.concatenate %15, %17 in 0 : vector<2x8x16xf32>, vector<2x8x16xf32> -> vector<4x8x16xf32>
    %24 = tpu.concatenate %19, %21 in 0 : vector<2x8x16xf32>, vector<2x8x16xf32> -> vector<4x8x16xf32>
    "tpu.trace_start"() <{level = 10 : i32, message = "bqd,bkd->bqk"}> : () -> ()
    %cst_11 = arith.constant dense<0.000000e+00> : vector<4x8x8xf32>
    %25 = tpu.matmul %22, %23, %cst_11 {dimension_numbers = #tpu.dot_dimension_numbers<[2], [2], [1], [1], [0, 0, 0, 1, 1, 1], [0], [0]>} : vector<4x8x16xf32>, vector<4x8x16xf32>, vector<4x8x8xf32> -> vector<4x8x8xf32>
    "tpu.trace_stop"() : () -> ()
    %cst_12 = arith.constant dense<0xFF800000> : vector<4x8xf32>
    %26 = vector.multi_reduction <maximumf>, %25, %cst_12 [2] : vector<4x8x8xf32> to vector<4x8xf32>
    %27 = vector.shape_cast %26 : vector<4x8xf32> to vector<4x8x1xf32>
    %28 = vector.broadcast %27 : vector<4x8x1xf32> to vector<4x8x8xf32>
    %29 = arith.subf %25, %28 : vector<4x8x8xf32>
    %30 = math.exp %29 : vector<4x8x8xf32>
    %cst_13 = arith.constant dense<0.000000e+00> : vector<4x8xf32>
    %31 = vector.multi_reduction <add>, %30, %cst_13 [2] : vector<4x8x8xf32> to vector<4x8xf32>
    %32 = vector.shape_cast %31 : vector<4x8xf32> to vector<4x8x1xf32>
    "tpu.trace_start"() <{level = 10 : i32, message = "bqk,bkd->bqd"}> : () -> ()
    %cst_14 = arith.constant dense<0.000000e+00> : vector<4x8x16xf32>
    %33 = tpu.matmul %30, %24, %cst_14 {dimension_numbers = #tpu.dot_dimension_numbers<[2], [1], [1], [2], [0, 0, 0, 1, 1, 2], [0], [0]>} : vector<4x8x8xf32>, vector<4x8x16xf32>, vector<4x8x16xf32> -> vector<4x8x16xf32>
    "tpu.trace_stop"() : () -> ()
    %34 = tpu.reciprocal %32 {approx = true} : vector<4x8x1xf32> -> vector<4x8x1xf32>
    %35 = vector.broadcast %34 : vector<4x8x1xf32> to vector<4x8x16xf32>
    %36 = arith.mulf %33, %35 : vector<4x8x16xf32>
    %37 = vector.shape_cast %36 : vector<4x8x16xf32> to vector<2x2x8x16xf32>
    %38 = vector.extract_strided_slice %37 {offsets = [0, 0, 0, 0], sizes = [1, 2, 8, 16], strides = [1, 1, 1, 1]} : vector<2x2x8x16xf32> to vector<1x2x8x16xf32>
    %39 = vector.shape_cast %38 : vector<1x2x8x16xf32> to vector<2x8x16xf32>
    %40 = vector.extract_strided_slice %37 {offsets = [1, 0, 0, 0], sizes = [1, 2, 8, 16], strides = [1, 1, 1, 1]} : vector<2x2x8x16xf32> to vector<1x2x8x16xf32>
    %41 = vector.shape_cast %40 : vector<1x2x8x16xf32> to vector<2x8x16xf32>
    %42 = tpu.concatenate %39, %41 in 2 : vector<2x8x16xf32>, vector<2x8x16xf32> -> vector<2x8x32xf32>
    %43 = vector.shape_cast %42 : vector<2x8x32xf32> to vector<16x32xf32>
    %c0_15 = arith.constant 0 : index
    %c0_16 = arith.constant 0 : index
    %44 = vector.load %arg5[%c0_15, %c0_16] : memref<32x32xf32, #tpu.memory_space<vmem>>, vector<32x32xf32>
    %cst_17 = arith.constant dense<0.000000e+00> : vector<16x32xf32>
    %45 = tpu.matmul %43, %44, %cst_17 {dimension_numbers = #tpu.dot_dimension_numbers<[1], [0], [0], [1], [0, 0, 1, 1], [], []>} : vector<16x32xf32>, vector<32x32xf32>, vector<16x32xf32> -> vector<16x32xf32>
    %c0_18 = arith.constant 0 : index
    %c0_19 = arith.constant 0 : index
    %46 = vector.load %arg6[%c0_18, %c0_19] : memref<1x32xf32, #tpu.memory_space<vmem>>, vector<1x32xf32>
    %47 = vector.broadcast %46 : vector<1x32xf32> to vector<16x32xf32>
    %48 = arith.addf %45, %47 : vector<16x32xf32>
    %49 = arith.addf %1, %48 : vector<16x32xf32>
    %cst_20 = arith.constant dense<0.000000e+00> : vector<16xf32>
    %50 = vector.multi_reduction <add>, %49, %cst_20 [1] : vector<16x32xf32> to vector<16xf32>
    %51 = vector.shape_cast %50 : vector<16xf32> to vector<16x1xf32>
    %cst_21 = arith.constant 3.200000e+01 : f32
    %52 = vector.broadcast %cst_21 : f32 to vector<16x1xf32>
    %53 = arith.divf %51, %52 : vector<16x1xf32>
    %54 = vector.broadcast %53 : vector<16x1xf32> to vector<16x32xf32>
    %55 = arith.subf %49, %54 : vector<16x32xf32>
    %56 = arith.mulf %55, %55 : vector<16x32xf32>
    %cst_22 = arith.constant dense<0.000000e+00> : vector<16xf32>
    %57 = vector.multi_reduction <add>, %56, %cst_22 [1] : vector<16x32xf32> to vector<16xf32>
    %58 = vector.shape_cast %57 : vector<16xf32> to vector<16x1xf32>
    %cst_23 = arith.constant 3.200000e+01 : f32
    %59 = vector.broadcast %cst_23 : f32 to vector<16x1xf32>
    %60 = arith.divf %58, %59 : vector<16x1xf32>
    %61 = vector.broadcast %53 : vector<16x1xf32> to vector<16x32xf32>
    %62 = arith.subf %49, %61 : vector<16x32xf32>
    %cst_24 = arith.constant 9.99999974E-6 : f32
    %63 = vector.broadcast %cst_24 : f32 to vector<16x1xf32>
    %64 = arith.addf %60, %63 : vector<16x1xf32>
    %65 = math.rsqrt %64 : vector<16x1xf32>
    %66 = vector.broadcast %65 : vector<16x1xf32> to vector<16x32xf32>
    %67 = arith.mulf %62, %66 : vector<16x32xf32>
    %c0_25 = arith.constant 0 : index
    %c0_26 = arith.constant 0 : index
    %68 = vector.load %arg7[%c0_25, %c0_26] : memref<1x32xf32, #tpu.memory_space<vmem>>, vector<1x32xf32>
    %69 = vector.broadcast %68 : vector<1x32xf32> to vector<16x32xf32>
    %70 = arith.mulf %67, %69 : vector<16x32xf32>
    %c0_27 = arith.constant 0 : index
    %c0_28 = arith.constant 0 : index
    %71 = vector.load %arg8[%c0_27, %c0_28] : memref<1x32xf32, #tpu.memory_space<vmem>>, vector<1x32xf32>
    %72 = vector.broadcast %71 : vector<1x32xf32> to vector<16x32xf32>
    %73 = arith.addf %70, %72 : vector<16x32xf32>
    %74 = vector.shape_cast %73 : vector<16x32xf32> to vector<2x8x32xf32>
    %c0_29 = arith.constant 0 : index
    %c0_30 = arith.constant 0 : index
    %c0_31 = arith.constant 0 : index
    %75 = vector.load %arg9[%c0_29, %c0_30, %c0_31] : memref<2x8x32xf32, #tpu.memory_space<vmem>>, vector<2x8x32xf32>
    tpu.vector_store %arg9[%c0_29, %c0_30, %c0_31], %74 {strides = array<i32>} : memref<2x8x32xf32, #tpu.memory_space<vmem>>, vector<2x8x32xf32>,
    return
  }
  func.func @transform_0(%arg0: i32) -> (i32, i32, i32) {
    %c0_i32 = arith.constant 0 : i32
    %c0_i32_0 = arith.constant 0 : i32
    %c0_i32_1 = arith.constant 0 : i32
    return %arg0, %c0_i32, %c0_i32_0 : i32, i32, i32
  }
  func.func @transform_1(%arg0: i32) -> (i32, i32, i32) {
    %c0_i32 = arith.constant 0 : i32
    %c0_i32_0 = arith.constant 0 : i32
    %c0_i32_1 = arith.constant 0 : i32
    return %arg0, %c0_i32, %c0_i32_0 : i32, i32, i32
  }
  func.func @transform_2(%arg0: i32) -> (i32, i32) {
    %c0_i32 = arith.constant 0 : i32
    %c0_i32_0 = arith.constant 0 : i32
    %c0_i32_1 = arith.constant 0 : i32
    return %c0_i32, %c0_i32_0 : i32, i32
  }
  func.func @transform_3(%arg0: i32) -> (i32, i32) {
    %c0_i32 = arith.constant 0 : i32
    %c0_i32_0 = arith.constant 0 : i32
    %c0_i32_1 = arith.constant 0 : i32
    return %c0_i32, %c0_i32_0 : i32, i32
  }
  func.func @transform_4(%arg0: i32) -> (i32, i32) {
    %c0_i32 = arith.constant 0 : i32
    %c0_i32_0 = arith.constant 0 : i32
    %c0_i32_1 = arith.constant 0 : i32
    return %c0_i32, %c0_i32_0 : i32, i32
  }
  func.func @transform_5(%arg0: i32) -> (i32, i32) {
    %c0_i32 = arith.constant 0 : i32
    %c0_i32_0 = arith.constant 0 : i32
    %c0_i32_1 = arith.constant 0 : i32
    return %c0_i32, %c0_i32_0 : i32, i32
  }
  func.func @transform_6(%arg0: i32) -> (i32, i32) {
    %c0_i32 = arith.constant 0 : i32
    %c0_i32_0 = arith.constant 0 : i32
    %c0_i32_1 = arith.constant 0 : i32
    return %c0_i32, %c0_i32_0 : i32, i32
  }
  func.func @transform_7(%arg0: i32) -> (i32, i32) {
    %c0_i32 = arith.constant 0 : i32
    %c0_i32_0 = arith.constant 0 : i32
    %c0_i32_1 = arith.constant 0 : i32
    return %c0_i32, %c0_i32_0 : i32, i32
  }
  func.func @transform_8(%arg0: i32) -> (i32, i32, i32) {
    %c0_i32 = arith.constant 0 : i32
    %c0_i32_0 = arith.constant 0 : i32
    %c0_i32_1 = arith.constant 0 : i32
    return %arg0, %c0_i32, %c0_i32_0 : i32, i32, i32
  }
}

</mosaic_0001>

<bundles_post_ra>
// kernel: tpu_custom_call.1
= control target key start
LH: loop header
LB: loop body
LE: loop exit
PB: predicated region body
PF: predicated region fallthrough
CT: control target
= control target key end

     0   :  { %13 = vsyncpa [#allocation3], 0  ;;  %s1671_s0 = inlined_call_operand.hbm [shape: f32[2,8,32], index: 0, kind: input, shape index: {}]   ;;  %s1672_s1 = inlined_call_operand.hbm [shape: f32[2,8,32], index: 1, kind: input, shape index: {}]   ;;  %s1673_s2 = inlined_call_operand.hbm [shape: f32[32,32], index: 2, kind: input, shape index: {}]   ;;  %s1674_s3 = inlined_call_operand.hbm [shape: f32[32,64], index: 3, kind: input, shape index: {}]   ;;  %s1675_s4 = inlined_call_operand.hbm [shape: f32[32,32], index: 4, kind: input, shape index: {}]   ;;  %s1676_s5 = inlined_call_operand.vmem [shape: f32[1,32], index: 5, kind: input, shape index: {}]   ;;  %s1677_s6 = inlined_call_operand.vmem [shape: f32[1,32], index: 6, kind: input, shape index: {}]   ;;  %s1678_s7 = inlined_call_operand.vmem [shape: f32[1,32], index: 7, kind: input, shape index: {}]   ;;  %s1679_s8 = inlined_call_operand.hbm [shape: f32[2,8,32], index: 8, kind: output, shape index: {}]  }
   0x1   :  { %14 = vsyncpa [#allocation6], 0 }
   0x2   :  { %15 = vsyncpa [#allocation9], 0 }
   0x3   :  { %16 = vsyncpa [#allocation4], 0  ;;  %s1428_s27 = smov [#allocation5]   ;;  %s1429_s29 = smov [#allocation8]  }
   0x4   :  { %s34_s28 = sshll.u32 %s1428_s27, 4  ;;  %s58_s30 = sshll.u32 %s1429_s29, 4  ;;  %s35_s28 = int_to_ptr.vmem [resolvable:$true] %s34_s28  ;;  %s1486_s30 = int_to_ptr.vmem [resolvable:$true] %s58_s30 }
   0x5   :  { %s1288_s11 = scalar_lea.hbm %s1672_s1, 256 }
   0x6   :  { %p1289_p0 = scmp.ne.s32.totalorder %s1672_s1, %s1288_s11  ;;  %p1292_p1 = scmp.lt.u32.totalorder %s1288_s11, %s1672_s1 }
   0x8   :  { %p1294_p2 = pnand %p1292_p1, %p1289_p0 }
   0xa   :  { %1297 = shalt.err (!%p1294_p2)
}
   0xb   :  { %s1298_s16 = scalar_lea.vmem %s35_s28, 256  ;;  %p1303_p4 = scmp.lt.s32.totalorder %s35_s28, %s35_s28 }
   0xc   :  { %p1299_p3 = scmp.ne.s32.totalorder %s35_s28, %s1298_s16  ;;  %p1304_p5 = scmp.lt.s32.totalorder %s1298_s16, %s1298_s16 }
   0xe   :  { %p1305_p6 = por %p1304_p5, %p1303_p4 }
  0x10   :  { %p1306_p7 = pnand %p1305_p6, %p1299_p3 }
  0x12   :  { %1309 = shalt.err (!%p1306_p7)
}
  0x13   :  { %s1430_s17 = smov 128   ;;  %s1431_s18 = smov 8  }
  0x14   :  { %40 = dma.hbm_to_vmem [thread:$0]  %s1672_s1, 256, %s35_s28, [#allocation6], %s1430_s17, %s1430_s17, %s1431_s18  }
  0x15   :  { %s1310_s23 = scalar_lea.hbm %s1674_s3, 512 }
  0x16   :  { %p1311_p8 = scmp.ne.s32.totalorder %s1674_s3, %s1310_s23  ;;  %p1314_p9 = scmp.lt.u32.totalorder %s1310_s23, %s1674_s3 }
  0x18   :  { %p1316_p10 = pnand %p1314_p9, %p1311_p8 }
  0x1a   :  { %1319 = shalt.err (!%p1316_p10)
}
  0x1b   :  { %s1320_s29 = scalar_lea.vmem %s1486_s30, 512  ;;  %p1325_p12 = scmp.lt.s32.totalorder %s1486_s30, %s1486_s30 }
  0x1c   :  { %p1321_p11 = scmp.ne.s32.totalorder %s1486_s30, %s1320_s29  ;;  %p1326_p13 = scmp.lt.s32.totalorder %s1320_s29, %s1320_s29 }
  0x1e   :  { %p1327_p0 = por %p1326_p13, %p1325_p12 }
  0x20   :  { %p1328_p1 = pnand %p1327_p0, %p1321_p11 }
  0x22   :  { %1331 = shalt.err (!%p1328_p1)
}
  0x23   :  { %64 = dma.hbm_to_vmem [thread:$0]  %s1674_s3, 512, %s1486_s30, [#allocation9], %s1430_s17, %s1430_s17, %s1431_s18  }
  0x24   :  { %s1432_s9 = smov [#allocation2]   ;;  %s1433_s11 = smov [#allocation7]  }
  0x25   :  { %s22_s10 = sshll.u32 %s1432_s9, 4  ;;  %s46_s12 = sshll.u32 %s1433_s11, 4  ;;  %s23_s10 = int_to_ptr.vmem [resolvable:$true] %s22_s10  ;;  %s1523_s12 = int_to_ptr.vmem [resolvable:$true] %s46_s12 }
  0x26   :  { %s1332_s15 = scalar_lea.hbm %s1671_s0, 256 }
  0x27   :  { %p1333_p2 = scmp.ne.s32.totalorder %s1671_s0, %s1332_s15  ;;  %p1336_p3 = scmp.lt.u32.totalorder %s1332_s15, %s1671_s0 }
  0x29   :  { %p1338_p4 = pnand %p1336_p3, %p1333_p2 }
  0x2b   :  { %1341 = shalt.err (!%p1338_p4)
}
  0x2c   :  { %s1342_s3 = scalar_lea.vmem %s23_s10, 256  ;;  %p1347_p6 = scmp.lt.s32.totalorder %s23_s10, %s23_s10 }
  0x2d   :  { %p1343_p5 = scmp.ne.s32.totalorder %s23_s10, %s1342_s3  ;;  %p1348_p7 = scmp.lt.s32.totalorder %s1342_s3, %s1342_s3 }
  0x2f   :  { %p1349_p8 = por %p1348_p7, %p1347_p6 }
  0x31   :  { %p1350_p9 = pnand %p1349_p8, %p1343_p5 }
  0x33   :  { %1353 = shalt.err (!%p1350_p9)
}
  0x34   :  { %28 = dma.hbm_to_vmem [thread:$0]  %s1671_s0, 256, %s23_s10, [#allocation3], %s1430_s17, %s1430_s17, %s1431_s18  }
  0x35   :  { %s1354_s25 = scalar_lea.hbm %s1673_s2, 512 }
  0x36   :  { %p1355_p10 = scmp.ne.s32.totalorder %s1673_s2, %s1354_s25  ;;  %p1358_p11 = scmp.lt.u32.totalorder %s1354_s25, %s1673_s2 }
  0x38   :  { %p1360_p12 = pnand %p1358_p11, %p1355_p10 }
  0x3a   :  { %1363 = shalt.err (!%p1360_p12)
}
  0x3b   :  { %s1364_s28 = scalar_lea.vmem %s1523_s12, 512  ;;  %p1369_p0 = scmp.lt.s32.totalorder %s1523_s12, %s1523_s12 }
  0x3c   :  { %p1365_p13 = scmp.ne.s32.totalorder %s1523_s12, %s1364_s28  ;;  %p1370_p1 = scmp.lt.s32.totalorder %s1364_s28, %s1364_s28 }
  0x3e   :  { %p1371_p2 = por %p1370_p1, %p1369_p0 }
  0x40   :  { %p1372_p3 = pnand %p1371_p2, %p1365_p13 }
  0x42   :  { %1375 = shalt.err (!%p1372_p3)
}
  0x43   :  { %52 = dma.hbm_to_vmem [thread:$0]  %s1673_s2, 512, %s1523_s12, [#allocation6], %s1430_s17, %s1430_s17, %s1431_s18  }
  0x44   :  { %s1434_s10 = smov [#allocation10]   ;;  %s1376_s15 = scalar_lea.hbm %s1675_s4, 512 }
  0x45   :  { %s70_s11 = sshll.u32 %s1434_s10, 4  ;;  %p1377_p4 = scmp.ne.s32.totalorder %s1675_s4, %s1376_s15  ;;  %s71_s11 = int_to_ptr.vmem [resolvable:$true] %s70_s11 }
  0x46   :  { %p1380_p5 = scmp.lt.u32.totalorder %s1376_s15, %s1675_s4 }
  0x48   :  { %p1382_p6 = pnand %p1380_p5, %p1377_p4 }
  0x4a   :  { %1385 = shalt.err (!%p1382_p6)
}
  0x4b   :  { %s1386_s3 = scalar_lea.vmem %s71_s11, 512  ;;  %p1391_p8 = scmp.lt.s32.totalorder %s71_s11, %s71_s11 }
  0x4c   :  { %p1387_p7 = scmp.ne.s32.totalorder %s71_s11, %s1386_s3  ;;  %p1392_p9 = scmp.lt.s32.totalorder %s1386_s3, %s1386_s3 }
  0x4e   :  { %p1393_p10 = por %p1392_p9, %p1391_p8 }
  0x50   :  { %p1394_p11 = pnand %p1393_p10, %p1387_p7 }
  0x52   :  { %1397 = shalt.err (!%p1394_p11)
}
  0x53   :  { %76 = dma.hbm_to_vmem [thread:$0]  %s1675_s4, 512, %s71_s11, [#allocation9], %s1430_s17, %s1430_s17, %s1431_s18  }
  0x54   :  { %1420 = dma.done.wait [#allocation3], 256  }
  0x55   :  { %1421 = vsyncadd [#allocation3], 4294967040 }
  0x56   :  { %1422 = dma.done.wait [#allocation6], 768  }
  0x57   :  { %1423 = vsyncadd [#allocation6], 4294966528 }
  0x58   :  { %1424 = dma.done.wait [#allocation9], 1024  }
  0x59   :  { %1425 = vsyncadd [#allocation9], 4294966272  ;;  %v102_v0 = vld [vmem:[#allocation7] sm:$0xff]  ;;  %v103_v1 = vld [vmem:[#allocation7 + $0x8] sm:$0xff]  ;;  %vm106_vm0 = vcmask 261120   ;;  %v1435_v16 = vmov 0.0  }
  0x5a   :  { %v190_v2 = vld [vmem:[#allocation8] sm:$0xff]  ;;  %v1231_v3 = vpack.c.bf16 %v103_v1, %v102_v0  ;;  %v191_v4 = vld [vmem:[#allocation8 + $0x8] sm:$0xff]  ;;  %v104_v5 = vld [vmem:[#allocation7 + $0x10] sm:$0xff]  ;;  %vm1436_vm1 = vmmov 0   ;;  %vm287_vm2 = vcmask 130048   ;;  %s1437_s4 = smov 96  }
  0x5b   :  { %v105_v6 = vld [vmem:[#allocation7 + $0x18] sm:$0xff]  ;;  %v1239_v7 = vpack.c.bf16 %v191_v4, %v190_v2  ;;  %v192_v9 = vld [vmem:[#allocation8 + $0x10] sm:$0xff]  ;;  %v1575_v11 = vld [vmem:[#allocation2] sm:$0xff]  ;;  %s1438_s30 = smov 112   ;;  %vm584_vm3 = vcmask 64512   ;;  %s1439_s22 = smov 16  }
  0x5c   :  { %v1235_v8 = vpack.c.bf16 %v105_v6, %v104_v5  ;;  %v193_v10 = vld [vmem:[#allocation8 + $0x18] sm:$0xff]  ;;  %1232 = vmatprep.subr.bf16.mxu0 %v1231_v3  ;;  %1166 = vmatprep.mubr.msk.f32.mxu0 %vm106_vm0, %v1575_v11  ;;  %v100_v13 = vld [vmem:[#allocation5] sm:$0xff]  ;;  %v1580_v14 = vld [vmem:[#allocation2 + $0x8] sm:$0xff]  ;;  %s1440_s29 = smov [#allocation11]  }
  0x5d   :  { %v1243_v12 = vpack.c.bf16 %v193_v10, %v192_v9  ;;  %1240 = vmatprep.subr.bf16.mxu1 %v1239_v7  ;;  %1234 = vmatpush3.bf16.msra.mxu0 %v1231_v3  ;;  %v101_v15 = vld [vmem:[#allocation5 + $0x8] sm:$0xff]  ;;  %v943_v63 = vld [vmem:[#allocation10] sm:$0xff]  ;;  %v944_v0 = vld [vmem:[#allocation10 + $0x8] sm:$0xff]  ;;  %s1089_s1 = sshll.u32 %s1440_s29, 4  ;;  %s1090_s1 = int_to_ptr.vmem [resolvable:$true] %s1089_s1 }
  0x5e   :  { %1242 = vmatpush3.bf16.msra.mxu1 %v1239_v7  ;;  %1236 = vmatprep.subr.bf16.mxu0 %v1235_v8  ;;  %v1247_v1 = vpack.c.bf16 %v944_v0, %v943_v63  ;;  %v945_v5 = vld [vmem:[#allocation10 + $0x10] sm:$0xff]  ;;  %v946_v6 = vld [vmem:[#allocation10 + $0x18] sm:$0xff]  ;;  %s1398_s28 = scalar_lea.vmem %s1090_s1, 256  ;;  %p1403_p13 = scmp.lt.s32.totalorder %s1090_s1, %s1090_s1 }
  0x5f   :  { %1244 = vmatprep.subr.bf16.mxu1 %v1243_v12  ;;  %1177 = vmatprep.mubr.msk.f32.mxu1 %vm106_vm0, %v100_v13  ;;  %p1399_p12 = scmp.ne.s32.totalorder %s1090_s1, %s1398_s28  ;;  %p1404_p0 = scmp.lt.s32.totalorder %s1398_s28, %s1398_s28 }
  0x61   :  { %1238 = vmatpush3.bf16.msra.mxu0 %v1235_v8  ;;  %v1251_v8 = vpack.c.bf16 %v946_v6, %v945_v5  ;;  %p1405_p1 = por %p1404_p0, %p1403_p13 }
  0x62   :  { %1246 = vmatpush3.bf16.msra.mxu1 %v1243_v12  ;;  %1190 = vmatprep.subr.mxu0 %v1435_v16 }
  0x63   :  { %1180 = vmatprep.subr.mxu1 %v1435_v16  ;;  %p1406_p2 = pnand %p1405_p1, %p1399_p12 }
  0x64   :  { %1167 = vmatmul.mubr.msk.f32.vlgmr.msra.gmra.mrb[0].mxu0 %vm106_vm0, %v1580_v14 }
  0x65   :  { %1178 = vmatmul.mubr.msk.f32.vlgmr.msra.gmra.mrb[0].mxu1 %vm106_vm0, %v101_v15  ;;  %1192 = vmatprep.mubr.msk.f32.mxu0 %vm1436_vm1, %v1435_v16 }
  0x66   :  { %1182 = vmatprep.mubr.msk.f32.mxu1 %vm1436_vm1, %v1435_v16 }
 0x137   :  { %v1168_v17 = vpop.f32.mrb[0].mxu0 }
 0x138   :  { %v1179_v18 = vpop.f32.mrb[0].mxu1  ;;  %v179_v19 = vpop.f32.mrb[1].mxu0  ;;  %v189_v22 = vmul.f32 0.25, %v1168_v17 }
 0x139   :  { %v188_v20 = vmul.f32 0.25, %v179_v19  ;;  %v266_v21 = vpop.f32.mrb[1].mxu1 }
 0x13a   :  { %283 = vrot.lane.b32.xlu0 %v266_v21, %s1437_s4  ;;  %1181 = vmatpush3.xpose.msk.msra.mxu1 %vm287_vm2, %v266_v21 }
 0x13b   :  { %277 = vrot.lane.b32.xlu1 %v188_v20, %s1438_s30  ;;  %1185 = vmatprep.subr.mxu1 %v1435_v16 }
 0x13d   :  { %1183 = vmatmul.mubr.msk.f32.vlgmr.msra.gmra.mrb[2].mxu1 %vm287_vm2, %v188_v20 }
 0x13e   :  { %285 = vrot.lane.b32.xlu0 %v1179_v18, %s1437_s4  ;;  %1186 = vmatpush3.xpose.msk.msra.mxu1 %vm287_vm2, %v1179_v18 }
 0x13f   :  { %279 = vrot.lane.b32.xlu1 %v189_v22, %s1438_s30  ;;  %1187 = vmatprep.mubr.msk.f32.mxu1 %vm1436_vm1, %v1435_v16 }
 0x140   :  { %1195 = vmatprep.subr.mxu1 %v1435_v16 }
 0x141   :  { %1188 = vmatmul.mubr.msk.f32.vlgmr.msra.gmra.mrb[4].mxu1 %vm287_vm2, %v189_v22 }
 0x142   :  { %1197 = vmatprep.mubr.msk.f32.mxu1 %vm1436_vm1, %v1435_v16 }
 0x143   :  { %621 = vrot.lane.b32.xlu1 %v266_v21, %s1438_s30 }
 0x1ac   :  { %v284_v23 = vpop.permute.xlu0 %283 }
 0x1ad   :  { %1191 = vmatpush3.xpose.msk.msra.mxu0 %vm287_vm2, %v284_v23  ;;  %v278_v24 = vpop.permute.xlu1 %277 }
 0x1ae   :  { %1200 = vmatprep.subr.mxu0 %v1435_v16 }
 0x1b0   :  { %v286_v25 = vpop.permute.xlu0 %285  ;;  %1193 = vmatmul.mubr.msk.f32.vlgmr.msra.gmra.mrb[2].mxu0 %vm287_vm2, %v278_v24 }
 0x1b1   :  { %1196 = vmatpush3.xpose.msk.msra.mxu1 %vm287_vm2, %v286_v25  ;;  %v280_v26 = vpop.permute.xlu1 %279  ;;  %1202 = vmatprep.mubr.msk.f32.mxu0 %vm1436_vm1, %v1435_v16 }
 0x1b2   :  { %1205 = vmatprep.subr.mxu1 %v1435_v16 }
 0x1b4   :  { %1198 = vmatmul.mubr.msk.f32.vlgmr.msra.gmra.mrb[6].mxu1 %vm287_vm2, %v280_v26 }
 0x1b5   :  { %v622_v27 = vpop.permute.xlu1 %621  ;;  %1207 = vmatprep.mubr.msk.f32.mxu1 %vm1436_vm1, %v1435_v16 }
 0x1b6   :  { %1201 = vmatpush3.msra.mxu0 %v622_v27 }
 0x1b7   :  { %1210 = vmatprep.subr.mxu0 %v1435_v16 }
 0x210   :  { %v358_v28 = vpop.f32.mrb[2].mxu1 }
 0x211   :  { %v1184_v29 = vpop.f32.mrb[3].mxu1  ;;  %v585_v30 = vsel %vm584_vm3, %v358_v28, -inf }
 0x212   :  { %586 = vmax.xlane.f32.xlu0 %v585_v30 }
 0x214   :  { %v432_v31 = vpop.f32.mrb[4].mxu1 }
 0x215   :  { %v1189_v32 = vpop.f32.mrb[5].mxu1  ;;  %v588_v33 = vsel %vm584_vm3, %v432_v31, -inf }
 0x216   :  { %589 = vmax.xlane.f32.xlu1 %v588_v33 }
 0x227   :  { %773 = vrot.lane.b32.xlu1 %v284_v23, %s1438_s30 }
 0x22b   :  { %849 = vrot.lane.b32.xlu1 %v286_v25, %s1438_s30 }
 0x283   :  { %v506_v34 = vpop.f32.mrb[2].mxu0 }
 0x284   :  { %v1194_v35 = vpop.f32.mrb[3].mxu0  ;;  %v591_v39 = vsel %vm584_vm3, %v506_v34, -inf }
 0x287   :  { %v580_v36 = vpop.f32.mrb[6].mxu1 }
 0x288   :  { %v1199_v37 = vpop.f32.mrb[7].mxu1  ;;  %v594_v38 = vsel %vm584_vm3, %v580_v36, -inf }
 0x289   :  { %595 = vmax.xlane.f32.xlu0 %v594_v38 }
 0x28d   :  { %592 = vmax.xlane.f32.xlu0 %v591_v39 }
 0x29f   :  { %v587_v40 = vpop.xlane.xlu0 %586 }
 0x2a0   :  { %v597_v41 = vsub.f32 %v358_v28, %v587_v40 }
 0x2a2   :  { %v601_v42 = vmul.f32 1.442695, %v597_v41 }
 0x2a3   :  { %v590_v43 = vpop.xlane.xlu1 %589  ;;  %697 = vrot.lane.b32.xlu0 %v1179_v18, %s1438_s30 }
 0x2a4   :  { %1268 = vpow2.f32 %v601_v42  ;;  %v598_v44 = vsub.f32 %v432_v31, %v590_v43  ;;  %v1119_v31 = vld [vmem:[%s1676_s5] ss:$0 sm:$0xff] }
 0x2a6   :  { %v603_v47 = vmul.f32 1.442695, %v598_v44 }
 0x2a7   :  { %v774_v46 = vpop.permute.xlu1 %773 }
 0x2a8   :  { %1270 = vpow2.f32 %v603_v47 }
 0x2ab   :  { %v850_v56 = vpop.permute.xlu1 %849 }
 0x2ae   :  { %v1269_v45 = vpop.eup %1268 }
 0x2af   :  { %1203 = vmatmul.mubr.msk.f32.vlgmr.msra.gmra.mrb[4].mxu0 %vm584_vm3, %v1269_v45  ;;  %v609_v61 = vsel %vm584_vm3, %v1269_v45, 0.0 }
 0x2b0   :  { %1211 = vmatpush3.msra.mxu0 %v774_v46  ;;  %1212 = vmatprep.mubr.msk.f32.mxu0 %vm1436_vm1, %v1435_v16 }
 0x2b1   :  { %1248 = vmatprep.subr.bf16.mxu0 %v1247_v1 }
 0x2b2   :  { %v1271_v55 = vpop.eup %1270 }
 0x2b3   :  { %v612_v62 = vsel %vm584_vm3, %v1271_v55, 0.0 }
 0x316   :  { %v596_v48 = vpop.xlane.xlu0 %595 }
 0x317   :  { %v600_v49 = vsub.f32 %v580_v36, %v596_v48 }
 0x319   :  { %v607_v50 = vmul.f32 1.442695, %v600_v49 }
 0x31a   :  { %v593_v51 = vpop.xlane.xlu0 %592 }
 0x31b   :  { %1272 = vpow2.f32 %v607_v50  ;;  %v599_v52 = vsub.f32 %v506_v34, %v593_v51 }
 0x31d   :  { %v605_v53 = vmul.f32 1.442695, %v599_v52 }
 0x31e   :  { %v698_v54 = vpop.permute.xlu0 %697 }
 0x31f   :  { %1274 = vpow2.f32 %v605_v53  ;;  %1206 = vmatpush3.msra.mxu1 %v698_v54 }
 0x320   :  { %1208 = vmatmul.mubr.msk.f32.vlgmr.msra.gmra.mrb[8].mxu1 %vm584_vm3, %v1271_v55  ;;  %1215 = vmatprep.subr.mxu1 %v1435_v16  ;;  %v1122_v55 = vld [vmem:[%s1677_s6] ss:$0 sm:$0xff] }
 0x321   :  { %1216 = vmatpush3.msra.mxu1 %v850_v56  ;;  %1217 = vmatprep.mubr.msk.f32.mxu1 %vm1436_vm1, %v1435_v16 }
 0x325   :  { %v1273_v57 = vpop.eup %1272 }
 0x326   :  { %1218 = vmatmul.mubr.msk.f32.vlgmr.msra.gmra.mrb[10].mxu1 %vm584_vm3, %v1273_v57  ;;  %v618_v58 = vsel %vm584_vm3, %v1273_v57, 0.0 }
 0x327   :  { %619 = vadd.xlane.f32.xlu1 %v618_v58 }
 0x329   :  { %v1275_v59 = vpop.eup %1274 }
 0x32a   :  { %1213 = vmatmul.mubr.msk.f32.vlgmr.msra.gmra.mrb[6].mxu0 %vm584_vm3, %v1275_v59  ;;  %v615_v60 = vsel %vm584_vm3, %v1275_v59, 0.0  ;;  %v1123_v59 = vld [vmem:[%s1678_s7] ss:$0 sm:$0xff] }
 0x32b   :  { %616 = vadd.xlane.f32.xlu0 %v615_v60  ;;  %1250 = vmatpush3.bf16.msra.mxu0 %v1247_v1 }
 0x32c   :  { %1252 = vmatprep.subr.bf16.mxu0 %v1251_v8 }
 0x32f   :  { %610 = vadd.xlane.f32.xlu0 %v609_v61  ;;  %1254 = vmatpush3.bf16.msra.mxu0 %v1251_v8 }
 0x333   :  { %613 = vadd.xlane.f32.xlu0 %v612_v62 }
 0x382   :  { %v693_v2 = vpop.f32.mrb[4].mxu0 }
 0x383   :  { %v1204_v3 = vpop.f32.mrb[5].mxu0 }
 0x3b4   :  { %v620_v4 = vpop.xlane.xlu1 %619 }
 0x3b5   :  { %1276 = vrcp.f32 %v620_v4 }
 0x3b8   :  { %v617_v7 = vpop.xlane.xlu0 %616 }
 0x3b9   :  { %1278 = vrcp.f32 %v617_v7 }
 0x3bc   :  { %v611_v21 = vpop.xlane.xlu0 %610 }
 0x3bd   :  { %1280 = vrcp.f32 %v611_v21 }
 0x3bf   :  { %v1277_v12 = vpop.eup %1276 }
 0x3c0   :  { %v614_v22 = vpop.xlane.xlu0 %613 }
 0x3c1   :  { %1282 = vrcp.f32 %v614_v22 }
 0x3c3   :  { %v1279_v17 = vpop.eup %1278 }
 0x3c7   :  { %v1281_v23 = vpop.eup %1280 }
 0x3c8   :  { %v929_v26 = vmul.f32 %v1281_v23, %v693_v2 }
 0x3cb   :  { %v1283_v24 = vpop.eup %1282 }
 0x3f3   :  { %v769_v9 = vpop.f32.mrb[8].mxu1 }
 0x3f4   :  { %v1209_v10 = vpop.f32.mrb[9].mxu1  ;;  %v930_v27 = vmul.f32 %v1283_v24, %v769_v9 }
 0x3f9   :  { %v921_v13 = vpop.f32.mrb[10].mxu1 }
 0x3fa   :  { %v932_v15 = vmul.f32 %v1277_v12, %v921_v13  ;;  %v1219_v16 = vpop.f32.mrb[11].mxu1 }
 0x3fc   :  { %937 = vrot.lane.b32.xlu0 %v932_v15, %s1439_s22 }
 0x3fd   :  { %v845_v18 = vpop.f32.mrb[6].mxu0 }
 0x3fe   :  { %v931_v19 = vmul.f32 %v1279_v17, %v845_v18  ;;  %v1214_v20 = vpop.f32.mrb[7].mxu0 }
 0x400   :  { %935 = vrot.lane.b32.xlu1 %v931_v19, %s1439_s22 }
 0x46e   :  { %v938_v25 = vpop.permute.xlu0 %937 }
 0x46f   :  { %v942_v30 = vsel %vm287_vm2, %v930_v27, %v938_v25 }
 0x472   :  { %v936_v28 = vpop.permute.xlu1 %935 }
 0x473   :  { %v941_v29 = vsel %vm287_vm2, %v929_v26, %v936_v28 }
 0x474   :  { %1228 = vmatprep.mubr.msk.f32.mxu0 %vm106_vm0, %v941_v29 }
 0x475   :  { %1229 = vmatmul.mubr.msk.f32.vlgmr.msra.gmra.mrb[8].mxu0 %vm106_vm0, %v942_v30 }
 0x548   :  { %v1230_v32 = vpop.f32.mrb[8].mxu0 }
 0x549   :  { %v1032_v33 = vadd.f32 %v1230_v32, %v1119_v31  ;;  %v1026_v34 = vpop.f32.mrb[9].mxu0 }
 0x54a   :  { %v1027_v35 = vadd.f32 %v1119_v31, %v1026_v34 }
 0x54b   :  { %v1036_v36 = vadd.f32 %v1032_v33, %v1580_v14 }
 0x54c   :  { %v1035_v37 = vadd.f32 %v1027_v35, %v1575_v11 }
 0x54d   :  { %v1040_v38 = vsel %vm106_vm0, %v1036_v36, 0.0 }
 0x54e   :  { %1041 = vadd.xlane.f32.xlu0 %v1040_v38  ;;  %v1037_v39 = vsel %vm106_vm0, %v1035_v37, 0.0 }
 0x54f   :  { %1038 = vadd.xlane.f32.xlu1 %v1037_v39 }
 0x5db   :  { %v1042_v40 = vpop.xlane.xlu0 %1041 }
 0x5dc   :  { %v1045_v41 = vmul.f32 0.03125, %v1042_v40  ;;  %v1039_v42 = vpop.xlane.xlu1 %1038 }
 0x5dd   :  { %v1044_v43 = vmul.f32 0.03125, %v1039_v42 }
 0x5de   :  { %v1047_v44 = vsub.f32 %v1036_v36, %v1045_v41 }
 0x5df   :  { %v1046_v45 = vsub.f32 %v1035_v37, %v1044_v43 }
 0x5e0   :  { %v1049_v46 = vmul.f32 %v1047_v44, %v1047_v44 }
 0x5e1   :  { %v1048_v47 = vmul.f32 %v1046_v45, %v1046_v45 }
 0x5e2   :  { %v1053_v48 = vsel %vm106_vm0, %v1049_v46, 0.0 }
 0x5e3   :  { %1054 = vadd.xlane.f32.xlu0 %v1053_v48  ;;  %v1050_v14 = vsel %vm106_vm0, %v1048_v47, 0.0 }
 0x5e4   :  { %1051 = vadd.xlane.f32.xlu1 %v1050_v14 }
 0x670   :  { %v1055_v11 = vpop.xlane.xlu0 %1054 }
 0x671   :  { %v1057_v49 = vmul.f32 0.03125, %v1055_v11  ;;  %v1052_v50 = vpop.xlane.xlu1 %1051 }
 0x672   :  { %v1056_v51 = vmul.f32 0.03125, %v1052_v50 }
 0x673   :  { %v1059_v52 = vadd.f32 1e-05, %v1057_v49 }
 0x674   :  { %v1058_v53 = vadd.f32 1e-05, %v1056_v51 }
 0x675   :  { %1284 = vrsqrt.f32 %v1059_v52 }
 0x676   :  { %1286 = vrsqrt.f32 %v1058_v53 }
 0x67f   :  { %v1285_v54 = vpop.eup %1284 }
 0x680   :  { %v1287_v56 = vpop.eup %1286  ;;  %v1063_v57 = vmul.f32 %v1285_v54, %v1047_v44 }
 0x681   :  { %v1062_v58 = vmul.f32 %v1287_v56, %v1046_v45 }
 0x682   :  { %v1072_v60 = vmul.f32 %v1122_v55, %v1063_v57 }
 0x683   :  { %v1071_v61 = vmul.f32 %v1122_v55, %v1062_v58 }
 0x684   :  { %v1081_v62 = vadd.f32 %v1123_v59, %v1072_v60 }
 0x685   :  { %v1080_v63 = vadd.f32 %v1123_v59, %v1071_v61 }
 0x686   :  { %1083 = vst.msk [vmem:[#allocation11 + $0x8] sm:$0xff] %vm106_vm0, %v1081_v62 }
 0x687   :  { %1082 = vst.msk [vmem:[#allocation11] sm:$0xff] %vm106_vm0, %v1080_v63 }
 0x688   :  { %1409 = shalt.err (!%p1406_p2)
}
 0x689   :  { %s1410_s0 = scalar_lea.hbm %s1679_s8, 256 }
 0x68a   :  { %p1411_p3 = scmp.ne.s32.totalorder %s1679_s8, %s1410_s0  ;;  %p1414_p4 = scmp.lt.u32.totalorder %s1410_s0, %s1679_s8 }
 0x68c   :  { %p1416_p5 = pnand %p1414_p4, %p1411_p3 }
 0x68e   :  { %1419 = shalt.err (!%p1416_p5)
}
 0x68f   :  { %1095 = dma.vmem_to_hbm [thread:$0]  %s1090_s1, 256, %s1679_s8, [#allocation4], %s1430_s17, %s1430_s17, %s1431_s18  }
 0x690   :  { %1426 = dma.done.wait [#allocation4], 256  }
 0x691   :  { %1427 = vsyncadd [#allocation4], 4294967040 }
 0x692   :  { %1099 = vsyncpa [#allocation3], 1 }
 0x693   :  { %1100 = vsyncpa [#allocation6], 1 }
 0x694   :  { %1101 = vsyncpa [#allocation9], 1 }
 0x695   :  { %1102 = vsyncpa [#allocation4], 1 }

</bundles_post_ra>
